<compile_context>
chip_gen: v5e
topology: v5e:2x2
jax: 0.10.0
libtpu: 0.0.40
codegen_flags: <defaults>
</compile_context>

<pallas_src>
import functools

import jax
import jax.numpy as jnp
import numpy as np
from jax import lax
from jax.experimental import pallas as pl
from jax.experimental.pallas import tpu as pltpu

_LANE = 128
_SUB = 8


def _regression_loss_kernel(x_ref, t_ref, out_ref, *, in_gamma, gamma_s,
                            chunk_rows, fold, num_tiles, valid_rows_last):
    block_rows, C = x_ref.shape
    n_chunks = block_rows // chunk_rows
    neg_gamma = -float(in_gamma)

    def wd_chunk(start):
        x = x_ref[pl.ds(start, chunk_rows), :]
        t = t_ref[pl.ds(start, chunk_rows), :]
        d = (t - x).astype(jnp.float32)          # sub in input dtype (bf16 friendly)
        w = 1.0 - gamma_s * jnp.exp(t.astype(jnp.float32) * neg_gamma)
        return w * (d * d)

    def fold_rows(wd):
        # Fold chunk rows into a (fold, C) slab: aligned sublane groups ->
        # pure vreg-wise VPU adds (no XLU cross-lane reduce in the hot loop).
        if fold == 1:
            return jnp.sum(wd, axis=0, keepdims=True)
        return wd.reshape(-1, fold, C).sum(axis=0)

    def accum_chunks(n, acc):
        if n == 0:
            return acc
        if n == 1:
            return acc + fold_rows(wd_chunk(0))

        def body(i, a):
            start = pl.multiple_of(i * chunk_rows, chunk_rows)
            return a + fold_rows(wd_chunk(start))

        return lax.fori_loop(0, n, body, acc, unroll=(n <= 8))

    zero = jnp.zeros((fold, C), jnp.float32)

    def full_block():
        return accum_chunks(n_chunks, zero)

    def tail_block():
        # valid_rows_last / chunk_rows are trace-time Python ints: only the
        # partially-valid chunk pays the per-element mask.
        n_full = valid_rows_last // chunk_rows
        rem = valid_rows_last - n_full * chunk_rows
        acc = accum_chunks(n_full, zero)
        if rem:
            wd = wd_chunk(n_full * chunk_rows)
            row = lax.broadcasted_iota(jnp.int32, (chunk_rows, C), 0)
            wd = jnp.where(row < rem, wd, 0.0)   # mask garbage (possibly NaN/Inf) rows
            acc = acc + fold_rows(wd)
        return acc

    if valid_rows_last == block_rows:
        out_ref[0] = full_block()
    elif num_tiles == 1:
        out_ref[0] = tail_block()
    else:
        is_last = pl.program_id(0) == num_tiles - 1

        @pl.when(jnp.logical_not(is_last))
        def _():
            out_ref[0] = full_block()

        @pl.when(is_last)
        def _():
            out_ref[0] = tail_block()


def _vmem_capacity_bytes():
    try:
        return int(pltpu.get_tpu_info().vmem_capacity_bytes)
    except Exception:
        return 64 * 1024 * 1024  # conservative default (v7x per-TC VMEM)


def _plan(R, C, itemsize, max_block_rows=None):
    """Pick (block_rows, chunk_rows, fold, num_tiles, valid_last, vmem_limit)."""
    cap = _vmem_capacity_bytes()
    c_pad = max(_LANE, ((C + _LANE - 1) // _LANE) * _LANE)   # VMEM lane padding

    if R < _SUB:
        chunk_rows, fold = R, 1
    else:
        # ~256 KiB of live f32 per chunk temporary inside the kernel.
        chunk_rows = max(_SUB, ((256 * 1024) // (c_pad * 4)) // _SUB * _SUB)
        chunk_rows = min(chunk_rows, ((R + _SUB - 1) // _SUB) * _SUB)
        if max_block_rows is not None:
            chunk_rows = min(chunk_rows, max(_SUB, (max_block_rows // _SUB) * _SUB))
        fold = _SUB

    chunk_in_bytes = chunk_rows * c_pad * itemsize
    # Per-input DMA block budget (dtype-aware): 2 inputs x 2 buffers ~= 40% of VMEM.
    per_block_budget = max(chunk_in_bytes, cap // 10)
    n_chunks = max(1, per_block_budget // chunk_in_bytes)
    n_chunks = min(n_chunks, -(-R // chunk_rows))            # don't over-cover R
    if max_block_rows is not None:
        n_chunks = max(1, min(n_chunks, max_block_rows // chunk_rows))
    block_rows = n_chunks * chunk_rows

    num_tiles = -(-R // block_rows)
    valid_rows_last = R - (num_tiles - 1) * block_rows

    # VMEM limit from actual residency (double-buffered inputs + output +
    # bounded chunk temporaries), not a blanket cap//2.
    in_block_bytes = block_rows * c_pad * itemsize
    out_block_bytes = fold * c_pad * 4
    resident = (2 * 2 * in_block_bytes + 2 * out_block_bytes
                + 8 * chunk_rows * c_pad * 4)
    vmem_limit = int(min(cap, max(resident + (8 << 20), 32 << 20)))
    return block_rows, chunk_rows, fold, num_tiles, valid_rows_last, vmem_limit


def regression_loss(inp, tgt, *, in_gamma, gamma_s=0.9, max_block_rows=None):
    assert inp.shape == tgt.shape and inp.ndim >= 1
    assert inp.dtype == tgt.dtype
    batch = inp.shape[0]
    total = inp.size

    # Zero-copy contiguous 2-D view (no jnp.pad):
    #  * lane-dense (total//128, 128) when possible,
    #  * otherwise the native (batch, rest) view (last dim == full array dim).
    if total % _LANE == 0:
        R, C = total // _LANE, _LANE
    else:
        R, C = batch, total // batch
    x2 = inp.reshape(R, C)
    t2 = tgt.reshape(R, C)

    itemsize = np.dtype(inp.dtype).itemsize
    block_rows, chunk_rows, fold, num_tiles, valid_last, vmem_limit = _plan(
        R, C, itemsize, max_block_rows)

    kernel = functools.partial(
        _regression_loss_kernel,
        # TODO(synk): if in_gamma/gamma_s can be traced (learned params), pass
        # them through SMEM scalar prefetch instead of baking Python floats.
        in_gamma=float(in_gamma),
        gamma_s=float(gamma_s),
        chunk_rows=chunk_rows,
        fold=fold,
        num_tiles=num_tiles,
        valid_rows_last=valid_last,
    )

    partials = pl.pallas_call(
        kernel,
        out_shape=jax.ShapeDtypeStruct((num_tiles, fold, C), jnp.float32),
        grid_spec=pltpu.PrefetchScalarGridSpec(
            num_scalar_prefetch=0,
            grid=(num_tiles,),
            in_specs=[
                pl.BlockSpec((block_rows, C), lambda j: (j, 0)),
                pl.BlockSpec((block_rows, C), lambda j: (j, 0)),
            ],
            out_specs=pl.BlockSpec((1, fold, C), lambda j: (j, 0, 0)),
        ),
        compiler_params=pltpu.CompilerParams(
            # TODO(synk): use pltpu.CORE_PARALLEL on v7x builds (2 TCs) to
            # double the streaming bandwidth for this HBM-bound kernel.
            dimension_semantics=(pltpu.PARALLEL,),
            vmem_limit_bytes=vmem_limit,
        ),
    )(x2, t2)

    # Tiny final reduction + mean-over-batch scale outside the kernel.
    return jnp.sum(partials) * (1.0 / batch)


def regression_loss_ref(inp, tgt, *, in_gamma, gamma_s=0.9):
    inp = inp.astype(jnp.float32)
    tgt = tgt.astype(jnp.float32)
    delta = (tgt - inp) ** 2
    w = 1.0 - gamma_s * jnp.exp(-in_gamma * tgt)
    return jnp.sum(jnp.mean(w * delta, axis=0))


if __name__ == "__main__":
    IN_GAMMA = 0.5
    GAMMA_S = 0.9

    key = jax.random.PRNGKey(0)
    keys = jax.random.split(key, 8)

    # Test 1: f32, lane-aligned shape (single block, single chunk).
    inp = jax.random.normal(keys[0], (8, 128), dtype=jnp.float32)
    tgt = jax.random.normal(keys[1], (8, 128), dtype=jnp.float32)
    loss = jax.block_until_ready(
        regression_loss(inp, tgt, in_gamma=IN_GAMMA, gamma_s=GAMMA_S))
    ref = regression_loss_ref(inp, tgt, in_gamma=IN_GAMMA, gamma_s=GAMMA_S)
    np.testing.assert_allclose(np.asarray(loss), np.asarray(ref), rtol=1e-4, atol=1e-4)

    # Test 2: bf16, ragged tiny shape (native 2-D view, fold=1, no padding).
    inp2 = jax.random.normal(keys[2], (6, 50), dtype=jnp.float32).astype(jnp.bfloat16)
    tgt2 = jax.random.normal(keys[3], (6, 50), dtype=jnp.float32).astype(jnp.bfloat16)
    loss2 = jax.block_until_ready(
        regression_loss(inp2, tgt2, in_gamma=IN_GAMMA, gamma_s=GAMMA_S))
    ref2 = regression_loss_ref(inp2, tgt2, in_gamma=IN_GAMMA, gamma_s=GAMMA_S)
    np.testing.assert_allclose(np.asarray(loss2), np.asarray(ref2), rtol=5e-2, atol=5e-2)

    # Test 3: f32 ragged rows with a forced small block -> multi-tile grid,
    # pl.when full/tail split and masked last block.
    inp3 = jax.random.normal(keys[4], (50, 40), dtype=jnp.float32)
    tgt3 = jax.random.normal(keys[5], (50, 40), dtype=jnp.float32)
    loss3 = jax.block_until_ready(
        regression_loss(inp3, tgt3, in_gamma=IN_GAMMA, gamma_s=GAMMA_S,
                        max_block_rows=16))
    ref3 = regression_loss_ref(inp3, tgt3, in_gamma=IN_GAMMA, gamma_s=GAMMA_S)
    np.testing.assert_allclose(np.asarray(loss3), np.asarray(ref3), rtol=1e-4, atol=1e-4)

    # Test 4: f32, larger lane-dense view -> multi-chunk fori accumulation +
    # masked partial final chunk.
    inp4 = jax.random.normal(keys[6], (256, 520), dtype=jnp.float32)
    tgt4 = jax.random.normal(keys[7], (256, 520), dtype=jnp.float32)
    loss4 = jax.block_until_ready(
        regression_loss(inp4, tgt4, in_gamma=IN_GAMMA, gamma_s=GAMMA_S))
    ref4 = regression_loss_ref(inp4, tgt4, in_gamma=IN_GAMMA, gamma_s=GAMMA_S)
    np.testing.assert_allclose(np.asarray(loss4), np.asarray(ref4), rtol=1e-4, atol=1e-3)

    print("KERNEL_OK")
</pallas_src>

<mosaic_0001>
module attributes {stable_mosaic.version = 11 : i64} {
  func.func @_regression_loss_kernel(%arg0: i32, %arg1: memref<8x128xf32, #tpu.memory_space<vmem>>, %arg2: memref<8x128xf32, #tpu.memory_space<vmem>>, %arg3: memref<1x8x128xf32, #tpu.memory_space<vmem>>) attributes {dimension_semantics = [#tpu.dimension_semantics<parallel>], iteration_bounds = array<i64: 1>, scalar_prefetch = 0 : i64, scratch_operands = 0 : i64, tpu.core_type = #tpu.core_type<tc>, window_params = [{transform_indices = @transform_0, window_bounds = array<i64: 8, 128>}, {transform_indices = @transform_1, window_bounds = array<i64: 8, 128>}, {transform_indices = @transform_2, window_bounds = array<i64: 1, 8, 128>}]} {
    %cst = arith.constant 0.000000e+00 : f32
    %0 = vector.broadcast %cst : f32 to vector<8x128xf32>
    %c0 = arith.constant 0 : index
    %c0_0 = arith.constant 0 : index
    %1 = vector.load %arg1[%c0, %c0_0] : memref<8x128xf32, #tpu.memory_space<vmem>>, vector<8x128xf32>
    %c0_1 = arith.constant 0 : index
    %c0_2 = arith.constant 0 : index
    %2 = vector.load %arg2[%c0_1, %c0_2] : memref<8x128xf32, #tpu.memory_space<vmem>>, vector<8x128xf32>
    %3 = arith.subf %2, %1 : vector<8x128xf32>
    %cst_3 = arith.constant -5.000000e-01 : f32
    %4 = vector.broadcast %cst_3 : f32 to vector<8x128xf32>
    %5 = arith.mulf %2, %4 : vector<8x128xf32>
    %6 = math.exp %5 : vector<8x128xf32>
    %cst_4 = arith.constant 0.899999976 : f32
    %7 = vector.broadcast %cst_4 : f32 to vector<8x128xf32>
    %8 = arith.mulf %7, %6 : vector<8x128xf32>
    %cst_5 = arith.constant 1.000000e+00 : f32
    %9 = vector.broadcast %cst_5 : f32 to vector<8x128xf32>
    %10 = arith.subf %9, %8 : vector<8x128xf32>
    %11 = arith.mulf %3, %3 : vector<8x128xf32>
    %12 = arith.mulf %10, %11 : vector<8x128xf32>
    %13 = vector.shape_cast %12 : vector<8x128xf32> to vector<1x8x128xf32>
    %cst_6 = arith.constant dense<0.000000e+00> : vector<8x128xf32>
    %14 = vector.multi_reduction <add>, %13, %cst_6 [0] : vector<1x8x128xf32> to vector<8x128xf32>
    %15 = arith.addf %0, %14 : vector<8x128xf32>
    %c0_7 = arith.constant 0 : index
    %c0_8 = arith.constant 0 : index
    %c0_9 = arith.constant 0 : index
    %16 = vector.load %arg3[%c0_7, %c0_8, %c0_9] : memref<1x8x128xf32, #tpu.memory_space<vmem>>, vector<1x8x128xf32>
    %17 = vector.shape_cast %16 : vector<1x8x128xf32> to vector<8x128xf32>
    %18 = vector.shape_cast %15 : vector<8x128xf32> to vector<1x8x128xf32>
    tpu.vector_store %arg3[%c0_7, %c0_8, %c0_9], %18 {strides = array<i32>} : memref<1x8x128xf32, #tpu.memory_space<vmem>>, vector<1x8x128xf32>,
    return
  }
  func.func @transform_0(%arg0: i32) -> (i32, i32) {
    %c0_i32 = arith.constant 0 : i32
    %c0_i32_0 = arith.constant 0 : i32
    return %arg0, %c0_i32 : i32, i32
  }
  func.func @transform_1(%arg0: i32) -> (i32, i32) {
    %c0_i32 = arith.constant 0 : i32
    %c0_i32_0 = arith.constant 0 : i32
    return %arg0, %c0_i32 : i32, i32
  }
  func.func @transform_2(%arg0: i32) -> (i32, i32, i32) {
    %c0_i32 = arith.constant 0 : i32
    %c0_i32_0 = arith.constant 0 : i32
    %c0_i32_1 = arith.constant 0 : i32
    return %arg0, %c0_i32, %c0_i32_0 : i32, i32, i32
  }
}

</mosaic_0001>

<bundles_post_ra>
// kernel: tpu_custom_call.1
= control target key start
LH: loop header
LB: loop body
LE: loop exit
PB: predicated region body
PF: predicated region fallthrough
CT: control target
= control target key end

     0   :  { %7 = vsyncpa [#allocation3], 0  ;;  %s181_s0 = inlined_call_operand.hbm [shape: f32[8,128], index: 0, kind: input, shape index: {}]   ;;  %s182_s1 = inlined_call_operand.hbm [shape: f32[8,128], index: 1, kind: input, shape index: {}]   ;;  %s183_s2 = inlined_call_operand.hbm [shape: f32[1,8,128], index: 2, kind: output, shape index: {}]  }
   0x1   :  { %8 = vsyncpa [#allocation6], 0 }
   0x2   :  { %9 = vsyncpa [#allocation4], 0  ;;  %s15_s11 = sshll.u32 %s181_s0, 4  ;;  %s154_s12 = smov [#allocation2]   ;;  %s16_s11 = int_to_ptr.hbm [resolvable:$true] %s15_s11 }
   0x3   :  { %s17_s13 = sshll.u32 %s154_s12, 4  ;;  %s26_s16 = sshll.u32 %s182_s1, 4  ;;  %s18_s13 = int_to_ptr.vmem [resolvable:$true] %s17_s13  ;;  %s27_s16 = int_to_ptr.hbm [resolvable:$true] %s26_s16 }
   0x4   :  { %20 = dma.hbm_to_vmem [thread:$0]  %s16_s11, 128, %s18_s13, [#allocation3]  }
   0x5   :  { %s155_s17 = smov [#allocation5]  }
   0x6   :  { %s28_s18 = sshll.u32 %s155_s17, 4  ;;  %s29_s18 = int_to_ptr.vmem [resolvable:$true] %s28_s18 }
   0x7   :  { %31 = dma.hbm_to_vmem [thread:$0]  %s27_s16, 128, %s29_s18, [#allocation6]  }
   0x8   :  { %148 = dma.done.wait [#allocation3], 128  }
   0x9   :  { %149 = vsyncadd [#allocation3], 4294967168 }
   0xa   :  { %150 = dma.done.wait [#allocation6], 128  }
   0xb   :  { %151 = vsyncadd [#allocation6], 4294967168  ;;  %v41_v0 = vld [vmem:[#allocation5] sm:$0xff]  ;;  %v40_v3 = vld [vmem:[#allocation2] sm:$0xff]  ;;  %s156_s0 = smov [#allocation7]   ;;  %s60_s21 = sshll.u32 %s183_s2, 4  ;;  %s61_s21 = int_to_ptr.hbm [resolvable:$true] %s60_s21 }
   0xc   :  { %v43_v1 = vmul.f32 -0.5, %v41_v0  ;;  %v42_v4 = vsub.f32 %v41_v0, %v40_v3  ;;  %s58_s1 = sshll.u32 %s156_s0, 4  ;;  %s59_s1 = int_to_ptr.vmem [resolvable:$true] %s58_s1 }
   0xe   :  { %v44_v2 = vmul.f32 1.442695, %v43_v1  ;;  %v48_v7 = vmul.f32 %v42_v4, %v42_v4 }
  0x10   :  { %74 = vpow2.f32 %v44_v2 }
  0x16   :  { %v75_v5 = vpop.eup %74 }
  0x17   :  { %v46_v6 = vmul.f32 0.9, %v75_v5 }
  0x19   :  { %v47_v8 = vsub.f32 1.0, %v46_v6 }
  0x1b   :  { %v49_v9 = vmul.f32 %v48_v7, %v47_v8 }
  0x1d   :  { %52 = vst [vmem:[#allocation7] sm:$0xff] %v49_v9 }
  0x1e   :  { %63 = dma.vmem_to_hbm [thread:$0]  %s59_s1, 128, %s61_s21, [#allocation4]  }
  0x1f   :  { %152 = dma.done.wait [#allocation4], 128  }
  0x20   :  { %153 = vsyncadd [#allocation4], 4294967168 }
  0x21   :  { %68 = vsyncpa [#allocation3], 1 }
  0x22   :  { %69 = vsyncpa [#allocation6], 1 }
  0x23   :  { %70 = vsyncpa [#allocation4], 1 }

</bundles_post_ra>
